<compile_context>
chip_gen: v6e
topology: v6e:2x2x1
jax: 0.10.0
libtpu: 0.0.40
codegen_flags: <defaults>
</compile_context>

<pallas_src>
import jax
import jax.numpy as jnp
import numpy as np
from jax import lax
from jax.experimental import pallas as pl
from jax.experimental.pallas import tpu as pltpu


# ----------------------------------------------------------------------------------
# In-kernel shared core: build zero-padded tile in VMEM, im2col, one MXU matmul,
# shift + ReLU.  Returns a (th*W, Cout) f32 value.
# ----------------------------------------------------------------------------------
def _conv3x3_bn_relu_tile(xc_ref, xt_ref, xb_ref, w_ref, shift_ref, xp_scr, th, W):
    i = pl.program_id(1)           # H-tile index
    nt = pl.num_programs(1)
    Cin = xc_ref.shape[3]

    # Assemble the zero-padded (th+2, W+2, Cin) input tile in VMEM (f32 scratch so all
    # window stores / slices stay on well-supported 32-bit paths; the HBM side is bf16).
    xp_scr[...] = jnp.zeros_like(xp_scr)
    xp_scr[1:th + 1, 1:W + 1, :] = xc_ref[0].astype(jnp.float32)

    @pl.when(i > 0)                # top halo row (real neighbor row, else stays zero pad)
    def _():
        xp_scr[0:1, 1:W + 1, :] = xt_ref[0].astype(jnp.float32)

    @pl.when(i < nt - 1)           # bottom halo row
    def _():
        xp_scr[th + 1:th + 2, 1:W + 1, :] = xb_ref[0].astype(jnp.float32)

    # Load the padded tile ONCE and slice the value for the 9 taps.
    xp = xp_scr[...]                                   # (th+2, W+2, Cin) f32

    taps = []
    for dy in range(3):
        for dx in range(3):
            taps.append(xp[dy:dy + th, dx:dx + W, :])  # (th, W, Cin)

    # im2col: one K = 9*Cin matmul on the MXU (bf16 operands, f32 accumulation).
    p = jnp.concatenate(taps, axis=-1)                 # (th, W, 9*Cin)
    p = p.reshape(th * W, 9 * Cin).astype(jnp.bfloat16)
    acc = jnp.dot(p, w_ref[...], preferred_element_type=jnp.float32)

    # BN scale is pre-folded into w_ref; only the shift + ReLU remain.
    return jnp.maximum(acc + shift_ref[...], 0.0)      # (th*W, Cout) f32


def _conv_bn_relu_kernel(xc_ref, xt_ref, xb_ref, w_ref, shift_ref, out_ref, xp_scr):
    th, W = xc_ref.shape[1], xc_ref.shape[2]
    Cout = out_ref.shape[3]
    y = _conv3x3_bn_relu_tile(xc_ref, xt_ref, xb_ref, w_ref, shift_ref, xp_scr, th, W)
    out_ref[...] = y.reshape(1, th, W, Cout).astype(out_ref.dtype)


def _seg_head_kernel(xc_ref, xt_ref, xb_ref, w_ref, shift_ref, w1_ref, b1_ref,
                     out_ref, xp_scr):
    th, W = xc_ref.shape[1], xc_ref.shape[2]
    Ncls = out_ref.shape[3]
    y = _conv3x3_bn_relu_tile(xc_ref, xt_ref, xb_ref, w_ref, shift_ref, xp_scr, th, W)
    # Fused 1x1 conv + bias (bf16 operands, f32 accumulation + f32 bias).
    yb = y.astype(w1_ref.dtype)
    out = jnp.dot(yb, w1_ref[...], preferred_element_type=jnp.float32) + b1_ref[...]
    out_ref[...] = out.reshape(1, th, W, Ncls).astype(out_ref.dtype)


# ----------------------------------------------------------------------------------
# Wrappers
# ----------------------------------------------------------------------------------
def _pick_block_h(H, max_block_h):
    """Largest H-tile <= max_block_h that divides H (multiple of 8 when tiling)."""
    if H <= max_block_h:
        return H
    t = min((max_block_h // 8) * 8, H)
    while t >= 8:
        if H % t == 0:
            return t
        t -= 8
    return H


def _x_specs(H, W, Cin, th):
    center = pl.BlockSpec((1, th, W, Cin), lambda n, i: (n, i, 0, 0))
    # 1-row halo blocks: block size 1 along H -> block index == row index.
    top = pl.BlockSpec((1, 1, W, Cin),
                       lambda n, i: (n, jnp.maximum(i * th - 1, 0), 0, 0))
    bot = pl.BlockSpec((1, 1, W, Cin),
                       lambda n, i: (n, jnp.minimum(i * th + th, H - 1), 0, 0))
    return center, top, bot


def conv3x3_bn_relu(x, w2d, shift, max_block_h=64):
    """x: (N,H,W,Cin) bf16, w2d: (9*Cin, Cout) bf16 (BN scale folded), shift: (1,Cout) f32.
    Returns (N,H,W,Cout) bf16."""
    N, H, W, Cin = x.shape
    K9, Cout = w2d.shape
    assert K9 == 9 * Cin
    th = _pick_block_h(H, max_block_h)
    assert H % th == 0
    nt = H // th
    center, top, bot = _x_specs(H, W, Cin, th)

    return pl.pallas_call(
        _conv_bn_relu_kernel,
        out_shape=jax.ShapeDtypeStruct((N, H, W, Cout), jnp.bfloat16),
        grid_spec=pltpu.PrefetchScalarGridSpec(
            num_scalar_prefetch=0,
            grid=(N, nt),
            in_specs=[
                center, top, bot,
                pl.BlockSpec((K9, Cout), lambda n, i: (0, 0)),
                pl.BlockSpec((1, Cout), lambda n, i: (0, 0)),
            ],
            out_specs=pl.BlockSpec((1, th, W, Cout), lambda n, i: (n, i, 0, 0)),
            scratch_shapes=[pltpu.VMEM((th + 2, W + 2, Cin), jnp.float32)],
        ),
        # For production-size tiles on v6e, also raise vmem_limit_bytes here.
        compiler_params=pltpu.CompilerParams(
            dimension_semantics=("parallel", "parallel")),
    )(x, x, x, w2d, shift)


def seg_head(x, w2d, shift, w1, b1, max_block_h=64):
    """SegmentationHead: conv3x3+BN+ReLU fused with conv1x1+bias. Returns f32 NHWC."""
    N, H, W, Cin = x.shape
    K9, Cmid = w2d.shape
    Ncls = w1.shape[1]
    assert K9 == 9 * Cin
    th = _pick_block_h(H, max_block_h)
    assert H % th == 0
    nt = H // th
    center, top, bot = _x_specs(H, W, Cin, th)

    return pl.pallas_call(
        _seg_head_kernel,
        out_shape=jax.ShapeDtypeStruct((N, H, W, Ncls), jnp.float32),
        grid_spec=pltpu.PrefetchScalarGridSpec(
            num_scalar_prefetch=0,
            grid=(N, nt),
            in_specs=[
                center, top, bot,
                pl.BlockSpec((K9, Cmid), lambda n, i: (0, 0)),
                pl.BlockSpec((1, Cmid), lambda n, i: (0, 0)),
                pl.BlockSpec((Cmid, Ncls), lambda n, i: (0, 0)),
                pl.BlockSpec((1, Ncls), lambda n, i: (0, 0)),
            ],
            out_specs=pl.BlockSpec((1, th, W, Ncls), lambda n, i: (n, i, 0, 0)),
            scratch_shapes=[pltpu.VMEM((th + 2, W + 2, Cin), jnp.float32)],
        ),
        compiler_params=pltpu.CompilerParams(
            dimension_semantics=("parallel", "parallel")),
    )(x, x, x, w2d, shift, w1, b1)


def nearest_up2(x):
    """nn.Upsample(scale_factor=2, mode='nearest') in NHWC (free broadcast/reshape)."""
    N, H, W, C = x.shape
    x = jnp.broadcast_to(x[:, :, None, :, None, :], (N, H, 2, W, 2, C))
    return x.reshape(N, 2 * H, 2 * W, C)


def fold_bn_into_conv(w, gamma, beta, mean, var, eps=1e-5):
    """Fold inference BN into the conv weights: returns ((9*Cin, Cout) bf16, (1,Cout) f32)."""
    scale = gamma / jnp.sqrt(var + eps)
    shift = (beta - mean * scale).reshape(1, -1).astype(jnp.float32)
    wf = (w * scale[None, None, None, :]).reshape(-1, w.shape[-1]).astype(jnp.bfloat16)
    return wf, shift


def prepare_params(raw):
    P = {}
    for name in ("conv1", "conv2", "conv3", "head"):
        w, g, b, m, v = raw[name]
        wf, s = fold_bn_into_conv(w, g, b, m, v)
        P[name + "_w"] = wf
        P[name + "_shift"] = s
    P["w1x1"] = raw["w1x1"].astype(jnp.bfloat16)
    P["b1x1"] = raw["b1x1"].reshape(1, -1).astype(jnp.float32)
    return P


def sr_decoder_forward(x, P, fa=False, max_block_h=64):
    """SRDecoder.forward in NHWC. x: (N,H0,W0,channels) f32. Returns (N,8H0,8W0,3) f32."""
    h = x.astype(jnp.bfloat16)  # bf16 activation storage/DMA, f32 accumulation in-kernel
    h = conv3x3_bn_relu(nearest_up2(h), P["conv1_w"], P["conv1_shift"], max_block_h)
    h = conv3x3_bn_relu(nearest_up2(h), P["conv2_w"], P["conv2_shift"], max_block_h)
    feats = conv3x3_bn_relu(nearest_up2(h), P["conv3_w"], P["conv3_shift"], max_block_h)
    outs = seg_head(feats, P["head_w"], P["head_shift"], P["w1x1"], P["b1x1"], max_block_h)
    return (feats, outs) if fa else outs


# ----------------------------------------------------------------------------------
# Pure-JAX reference (same bf16 storage discipline, f32 accumulation)
# ----------------------------------------------------------------------------------
def _ref_conv_bn_relu(x_bf, w2d, shift):
    cin = w2d.shape[0] // 9
    cout = w2d.shape[1]
    w4 = w2d.reshape(3, 3, cin, cout)
    y = lax.conv_general_dilated(
        x_bf, w4, window_strides=(1, 1), padding=((1, 1), (1, 1)),
        dimension_numbers=("NHWC", "HWIO", "NHWC"),
        preferred_element_type=jnp.float32)
    return jnp.maximum(y + shift.reshape(1, 1, 1, -1), 0.0)


def reference_forward(x, P):
    h = x.astype(jnp.bfloat16)
    h = _ref_conv_bn_relu(nearest_up2(h), P["conv1_w"], P["conv1_shift"]).astype(jnp.bfloat16)
    h = _ref_conv_bn_relu(nearest_up2(h), P["conv2_w"], P["conv2_shift"]).astype(jnp.bfloat16)
    feats = _ref_conv_bn_relu(nearest_up2(h), P["conv3_w"], P["conv3_shift"]).astype(jnp.bfloat16)
    y = _ref_conv_bn_relu(feats, P["head_w"], P["head_shift"]).astype(jnp.bfloat16)
    out = jnp.einsum("nhwc,cd->nhwd", y, P["w1x1"],
                     preferred_element_type=jnp.float32)
    return out + P["b1x1"].reshape(1, 1, 1, -1)


# ----------------------------------------------------------------------------------
if __name__ == "__main__":
    # Demo-sized SRDecoder: channels=8 (default 128), input 4x4, 3 classes, batch 2.
    N = 2
    channels = 8
    c_half = channels // 2
    n_classes = 3
    h0 = w0 = 4   # -> 32x32 output after three nearest x2 upsamples

    key = jax.random.PRNGKey(0)
    ks = jax.random.split(key, 8)

    x = jax.random.normal(ks[0], (N, h0, w0, channels), jnp.float32)  # NHWC input

    def make_conv_bn(k, cin, cout):
        k1, k2, k3, k4, k5 = jax.random.split(k, 5)
        w = jax.random.normal(k1, (3, 3, cin, cout), jnp.float32) * 0.1
        gamma = jax.random.uniform(k2, (cout,), jnp.float32, 0.5, 1.5)
        beta = jax.random.normal(k3, (cout,), jnp.float32) * 0.1
        mean = jax.random.normal(k4, (cout,), jnp.float32) * 0.1
        var = jax.random.uniform(k5, (cout,), jnp.float32, 0.5, 1.5)
        return w, gamma, beta, mean, var

    raw = {
        "conv1": make_conv_bn(ks[1], channels, c_half),
        "conv2": make_conv_bn(ks[2], c_half, c_half),
        "conv3": make_conv_bn(ks[3], c_half, channels),
        "head":  make_conv_bn(ks[4], channels, c_half),
        "w1x1":  jax.random.normal(ks[5], (c_half, n_classes), jnp.float32) * 0.1,
        "b1x1":  jax.random.normal(ks[6], (n_classes,), jnp.float32) * 0.1,
    }
    P = prepare_params(raw)

    # max_block_h=16 so the 32-row stages tile over H (exercises the halo path & 2D grid).
    feats, outs = sr_decoder_forward(x, P, fa=True, max_block_h=16)
    outs = jax.block_until_ready(outs)

    ref = jax.block_until_ready(reference_forward(x, P))
    np.testing.assert_allclose(np.asarray(outs), np.asarray(ref), rtol=5e-2, atol=5e-2)

    print("KERNEL_OK")
</pallas_src>

<mosaic_0001>
module attributes {stable_mosaic.version = 11 : i64} {
  func.func @_conv_bn_relu_kernel(%arg0: i32, %arg1: i32, %arg2: memref<1x8x8x8xbf16, #tpu.memory_space<vmem>>, %arg3: memref<1x1x8x8xbf16, #tpu.memory_space<vmem>>, %arg4: memref<1x1x8x8xbf16, #tpu.memory_space<vmem>>, %arg5: memref<72x4xbf16, #tpu.memory_space<vmem>>, %arg6: memref<1x4xf32, #tpu.memory_space<vmem>>, %arg7: memref<1x8x8x4xbf16, #tpu.memory_space<vmem>>, %arg8: memref<10x10x8xf32, #tpu.memory_space<vmem>>) attributes {dimension_semantics = [#tpu.dimension_semantics<parallel>, #tpu.dimension_semantics<parallel>], iteration_bounds = array<i64: 2, 1>, scalar_prefetch = 0 : i64, scratch_operands = 1 : i64, tpu.core_type = #tpu.core_type<tc>, window_params = [{transform_indices = @transform_0, window_bounds = array<i64: 1, 8, 8, 8>}, {transform_indices = @transform_1, window_bounds = array<i64: 1, 1, 8, 8>}, {transform_indices = @transform_2, window_bounds = array<i64: 1, 1, 8, 8>}, {pipeline_mode = #tpu.pipeline_mode<synchronous>, transform_indices = @transform_3, window_bounds = array<i64: 72, 4>}, {pipeline_mode = #tpu.pipeline_mode<synchronous>, transform_indices = @transform_4, window_bounds = array<i64: 1, 4>}, {transform_indices = @transform_5, window_bounds = array<i64: 1, 8, 8, 4>}]} {
    %cst = arith.constant 0.000000e+00 : f32
    %0 = vector.broadcast %cst : f32 to vector<10x10x8xf32>
    %c0 = arith.constant 0 : index
    %c0_0 = arith.constant 0 : index
    %c0_1 = arith.constant 0 : index
    %1 = vector.load %arg8[%c0, %c0_0, %c0_1] : memref<10x10x8xf32, #tpu.memory_space<vmem>>, vector<10x10x8xf32>
    tpu.vector_store %arg8[%c0, %c0_0, %c0_1], %0 {strides = array<i32>} : memref<10x10x8xf32, #tpu.memory_space<vmem>>, vector<10x10x8xf32>,
    %c0_2 = arith.constant 0 : index
    %c0_3 = arith.constant 0 : index
    %c0_4 = arith.constant 0 : index
    %c0_5 = arith.constant 0 : index
    %2 = vector.load %arg2[%c0_2, %c0_3, %c0_4, %c0_5] : memref<1x8x8x8xbf16, #tpu.memory_space<vmem>>, vector<1x8x8x8xbf16>
    %3 = vector.shape_cast %2 : vector<1x8x8x8xbf16> to vector<8x8x8xbf16>
    %4 = arith.extf %3 : vector<8x8x8xbf16> to vector<8x8x8xf32>
    %c1 = arith.constant 1 : index
    %c1_6 = arith.constant 1 : index
    %c0_7 = arith.constant 0 : index
    %5 = vector.load %arg8[%c1, %c1_6, %c0_7] : memref<10x10x8xf32, #tpu.memory_space<vmem>>, vector<8x8x8xf32>
    tpu.vector_store %arg8[%c1, %c1_6, %c0_7], %4 {strides = array<i32>} : memref<10x10x8xf32, #tpu.memory_space<vmem>>, vector<8x8x8xf32>,
    %c0_i32 = arith.constant 0 : i32
    %6 = arith.cmpi sgt, %arg1, %c0_i32 : i32
    %7 = arith.extui %6 : i1 to i32
    %c0_i32_8 = arith.constant 0 : i32
    %8 = arith.cmpi ne, %7, %c0_i32_8 : i32
    scf.if %8 {
      %c0_24 = arith.constant 0 : index
      %c0_25 = arith.constant 0 : index
      %c0_26 = arith.constant 0 : index
      %c0_27 = arith.constant 0 : index
      %35 = vector.load %arg3[%c0_24, %c0_25, %c0_26, %c0_27] : memref<1x1x8x8xbf16, #tpu.memory_space<vmem>>, vector<1x1x8x8xbf16>
      %36 = vector.shape_cast %35 : vector<1x1x8x8xbf16> to vector<1x8x8xbf16>
      %37 = arith.extf %36 : vector<1x8x8xbf16> to vector<1x8x8xf32>
      %c0_28 = arith.constant 0 : index
      %c1_29 = arith.constant 1 : index
      %c0_30 = arith.constant 0 : index
      %38 = vector.load %arg8[%c0_28, %c1_29, %c0_30] : memref<10x10x8xf32, #tpu.memory_space<vmem>>, vector<1x8x8xf32>
      tpu.vector_store %arg8[%c0_28, %c1_29, %c0_30], %37 {strides = array<i32>} : memref<10x10x8xf32, #tpu.memory_space<vmem>>, vector<1x8x8xf32>,
    } else {
    }
    %c0_i32_9 = arith.constant 0 : i32
    %9 = arith.cmpi slt, %arg1, %c0_i32_9 : i32
    %10 = arith.extui %9 : i1 to i32
    %c0_i32_10 = arith.constant 0 : i32
    %11 = arith.cmpi ne, %10, %c0_i32_10 : i32
    scf.if %11 {
      %c0_24 = arith.constant 0 : index
      %c0_25 = arith.constant 0 : index
      %c0_26 = arith.constant 0 : index
      %c0_27 = arith.constant 0 : index
      %35 = vector.load %arg4[%c0_24, %c0_25, %c0_26, %c0_27] : memref<1x1x8x8xbf16, #tpu.memory_space<vmem>>, vector<1x1x8x8xbf16>
      %36 = vector.shape_cast %35 : vector<1x1x8x8xbf16> to vector<1x8x8xbf16>
      %37 = arith.extf %36 : vector<1x8x8xbf16> to vector<1x8x8xf32>
      %c9 = arith.constant 9 : index
      %c1_28 = arith.constant 1 : index
      %c0_29 = arith.constant 0 : index
      %38 = vector.load %arg8[%c9, %c1_28, %c0_29] : memref<10x10x8xf32, #tpu.memory_space<vmem>>, vector<1x8x8xf32>
      tpu.vector_store %arg8[%c9, %c1_28, %c0_29], %37 {strides = array<i32>} : memref<10x10x8xf32, #tpu.memory_space<vmem>>, vector<1x8x8xf32>,
    } else {
    }
    %c0_11 = arith.constant 0 : index
    %c0_12 = arith.constant 0 : index
    %c0_13 = arith.constant 0 : index
    %12 = vector.load %arg8[%c0_11, %c0_12, %c0_13] : memref<10x10x8xf32, #tpu.memory_space<vmem>>, vector<10x10x8xf32>
    %13 = vector.extract_strided_slice %12 {offsets = [0, 0, 0], sizes = [8, 8, 8], strides = [1, 1, 1]} : vector<10x10x8xf32> to vector<8x8x8xf32>
    %14 = vector.extract_strided_slice %12 {offsets = [0, 1, 0], sizes = [8, 8, 8], strides = [1, 1, 1]} : vector<10x10x8xf32> to vector<8x8x8xf32>
    %15 = vector.extract_strided_slice %12 {offsets = [0, 2, 0], sizes = [8, 8, 8], strides = [1, 1, 1]} : vector<10x10x8xf32> to vector<8x8x8xf32>
    %16 = vector.extract_strided_slice %12 {offsets = [1, 0, 0], sizes = [8, 8, 8], strides = [1, 1, 1]} : vector<10x10x8xf32> to vector<8x8x8xf32>
    %17 = vector.extract_strided_slice %12 {offsets = [1, 1, 0], sizes = [8, 8, 8], strides = [1, 1, 1]} : vector<10x10x8xf32> to vector<8x8x8xf32>
    %18 = vector.extract_strided_slice %12 {offsets = [1, 2, 0], sizes = [8, 8, 8], strides = [1, 1, 1]} : vector<10x10x8xf32> to vector<8x8x8xf32>
    %19 = vector.extract_strided_slice %12 {offsets = [2, 0, 0], sizes = [8, 8, 8], strides = [1, 1, 1]} : vector<10x10x8xf32> to vector<8x8x8xf32>
    %20 = vector.extract_strided_slice %12 {offsets = [2, 1, 0], sizes = [8, 8, 8], strides = [1, 1, 1]} : vector<10x10x8xf32> to vector<8x8x8xf32>
    %21 = vector.extract_strided_slice %12 {offsets = [2, 2, 0], sizes = [8, 8, 8], strides = [1, 1, 1]} : vector<10x10x8xf32> to vector<8x8x8xf32>
    %22 = tpu.concatenate %13, %14, %15, %16, %17, %18, %19, %20, %21 in 2 : vector<8x8x8xf32>, vector<8x8x8xf32>, vector<8x8x8xf32>, vector<8x8x8xf32>, vector<8x8x8xf32>, vector<8x8x8xf32>, vector<8x8x8xf32>, vector<8x8x8xf32>, vector<8x8x8xf32> -> vector<8x8x72xf32>
    %23 = vector.shape_cast %22 : vector<8x8x72xf32> to vector<64x72xf32>
    %24 = arith.truncf %23 : vector<64x72xf32> to vector<64x72xbf16>
    %c0_14 = arith.constant 0 : index
    %c0_15 = arith.constant 0 : index
    %25 = vector.load %arg5[%c0_14, %c0_15] : memref<72x4xbf16, #tpu.memory_space<vmem>>, vector<72x4xbf16>
    %cst_16 = arith.constant dense<0.000000e+00> : vector<64x4xf32>
    %26 = tpu.matmul %24, %25, %cst_16 {dimension_numbers = #tpu.dot_dimension_numbers<[1], [0], [0], [1], [0, 0, 1, 1], [], []>} : vector<64x72xbf16>, vector<72x4xbf16>, vector<64x4xf32> -> vector<64x4xf32>
    %c0_17 = arith.constant 0 : index
    %c0_18 = arith.constant 0 : index
    %27 = vector.load %arg6[%c0_17, %c0_18] : memref<1x4xf32, #tpu.memory_space<vmem>>, vector<1x4xf32>
    %28 = vector.broadcast %27 : vector<1x4xf32> to vector<64x4xf32>
    %29 = arith.addf %26, %28 : vector<64x4xf32>
    %cst_19 = arith.constant 0.000000e+00 : f32
    %30 = vector.broadcast %cst_19 : f32 to vector<64x4xf32>
    %31 = arith.maximumf %29, %30 : vector<64x4xf32>
    %32 = vector.shape_cast %31 : vector<64x4xf32> to vector<1x8x8x4xf32>
    %33 = arith.truncf %32 : vector<1x8x8x4xf32> to vector<1x8x8x4xbf16>
    %c0_20 = arith.constant 0 : index
    %c0_21 = arith.constant 0 : index
    %c0_22 = arith.constant 0 : index
    %c0_23 = arith.constant 0 : index
    %34 = vector.load %arg7[%c0_20, %c0_21, %c0_22, %c0_23] : memref<1x8x8x4xbf16, #tpu.memory_space<vmem>>, vector<1x8x8x4xbf16>
    tpu.vector_store %arg7[%c0_20, %c0_21, %c0_22, %c0_23], %33 {strides = array<i32>} : memref<1x8x8x4xbf16, #tpu.memory_space<vmem>>, vector<1x8x8x4xbf16>,
    return
  }
  func.func @transform_0(%arg0: i32, %arg1: i32) -> (i32, i32, i32, i32) {
    %c0_i32 = arith.constant 0 : i32
    %c0_i32_0 = arith.constant 0 : i32
    %c0_i32_1 = arith.constant 0 : i32
    return %arg0, %arg1, %c0_i32, %c0_i32_0 : i32, i32, i32, i32
  }
  func.func @transform_1(%arg0: i32, %arg1: i32) -> (i32, i32, i32, i32) {
    %c8_i32 = arith.constant 8 : i32
    %0 = arith.muli %arg1, %c8_i32 : i32
    %c1_i32 = arith.constant 1 : i32
    %1 = arith.subi %0, %c1_i32 : i32
    %c0_i32 = arith.constant 0 : i32
    %2 = arith.maxsi %1, %c0_i32 : i32
    %c0_i32_0 = arith.constant 0 : i32
    %c0_i32_1 = arith.constant 0 : i32
    %c0_i32_2 = arith.constant 0 : i32
    return %arg0, %2, %c0_i32_0, %c0_i32_1 : i32, i32, i32, i32
  }
  func.func @transform_2(%arg0: i32, %arg1: i32) -> (i32, i32, i32, i32) {
    %c8_i32 = arith.constant 8 : i32
    %0 = arith.muli %arg1, %c8_i32 : i32
    %c8_i32_0 = arith.constant 8 : i32
    %1 = arith.addi %0, %c8_i32_0 : i32
    %c7_i32 = arith.constant 7 : i32
    %2 = arith.minsi %1, %c7_i32 : i32
    %c0_i32 = arith.constant 0 : i32
    %c0_i32_1 = arith.constant 0 : i32
    %c0_i32_2 = arith.constant 0 : i32
    return %arg0, %2, %c0_i32, %c0_i32_1 : i32, i32, i32, i32
  }
  func.func @transform_3(%arg0: i32, %arg1: i32) -> (i32, i32) {
    %c0_i32 = arith.constant 0 : i32
    %c0_i32_0 = arith.constant 0 : i32
    %c0_i32_1 = arith.constant 0 : i32
    return %c0_i32, %c0_i32_0 : i32, i32
  }
  func.func @transform_4(%arg0: i32, %arg1: i32) -> (i32, i32) {
    %c0_i32 = arith.constant 0 : i32
    %c0_i32_0 = arith.constant 0 : i32
    %c0_i32_1 = arith.constant 0 : i32
    return %c0_i32, %c0_i32_0 : i32, i32
  }
  func.func @transform_5(%arg0: i32, %arg1: i32) -> (i32, i32, i32, i32) {
    %c0_i32 = arith.constant 0 : i32
    %c0_i32_0 = arith.constant 0 : i32
    %c0_i32_1 = arith.constant 0 : i32
    return %arg0, %arg1, %c0_i32, %c0_i32_0 : i32, i32, i32, i32
  }
}

</mosaic_0001>

<bundles_post_ra>
// kernel: tpu_custom_call.1
= control target key start
LH: loop header
LB: loop body
LE: loop exit
PB: predicated region body
PF: predicated region fallthrough
CT: control target
= control target key end

     0   :  { %s2094_s0 = inlined_call_operand.hbm [shape: bf16[2,8,8,8], index: 0, kind: input, shape index: {}]   ;;  %s2095_s1 = inlined_call_operand.hbm [shape: bf16[2,8,8,8], index: 1, kind: input, shape index: {}]   ;;  %s2096_s2 = inlined_call_operand.hbm [shape: bf16[2,8,8,8], index: 2, kind: input, shape index: {}]   ;;  %s2097_s3 = inlined_call_operand.vmem [shape: bf16[72,4], index: 3, kind: input, shape index: {}]   ;;  %s2098_s4 = inlined_call_operand.vmem [shape: f32[1,4], index: 4, kind: input, shape index: {}]   ;;  %s2099_s5 = inlined_call_operand.vmem [shape: bf16[2,8,8,4], index: 5, kind: output, shape index: {}]  }
   0x1   :  { %2105 = sst [smem:[#allocation14_spill]] %s2095_s1 }
   0x2   :  { %10 = vsyncpa [#allocation4], 0 }
   0x3   :  { %12 = vsyncpa [#allocation4 + $0x1], 0 }
   0x4   :  { %13 = vsyncpa [#allocation6], 0 }
   0x5   :  { %15 = vsyncpa [#allocation6 + $0x1], 0  ;;  %s1628_s18 = smov 0   ;;  %s1630_s19 = smov 0  }
   0x6   :  { %s1632_s20 = smov 0   ;;  %s1634_s21 = smov 0  }
   0x7   :  { %s1636_s22 = smov 0   ;;  %s1638_s23 = smov 0  }
   0x8 LB: > { %2106 = sst [smem:[#allocation10_spill]] %s1570_s20  ;;  %s2100_s24 = sadd.s32 4294967295, %s1582_s23   ;;  %s1582_s23 = sphi %s1638_s23, %s21_s23   ;;  %s1578_s22 = sphi %s1636_s22, %s2119_s22   ;;  %s1574_s21 = sphi %s1634_s21, %s2122_s21   ;;  %s1570_s20 = sphi %s1632_s20, %s2117_s20   ;;  %s1566_s19 = sphi %s1630_s19, %s2121_s19   ;;  %s1562_s18 = sphi %s1628_s18, %s2120_s18  }
   0x9   : > { %2107 = sst [smem:[#allocation11_spill]] %s1578_s22  ;;  %s33_s25 = sadd.s32 1, %s1578_s22 }
   0xa   : > { %p35_p0 = scmp.ge.s32.totalorder %s33_s25, 2  ;;  %s42_s26 = sadd.s32 1, %s1570_s20 }
   0xb   : > { %p49_p1 = scmp.ne.s32.totalorder %s1570_s20, %s1566_s19  ;;  %p50_p2 = scmp.eq.s32.totalorder %s1582_s23, 0 }
   0xc   : > { %s2124_s25 = smov (%p35_p0, %s33_s25), 0  ;;  %p55_p4 = scmp.ne.s32.totalorder %s1566_s19, %s1562_s18 }
   0xd   : > { %2108 = sst [smem:[#allocation12_spill]] %s2124_s25  ;;  %p51_p3 = por %p50_p2, %p49_p1 }
   0xe   : > { %s37_s27 = ssub.s32 %s1578_s22, %s2124_s25  ;;  %p56_p5 = scmp.eq.s32.totalorder %s2100_s24, 0 }
   0xf   : > { %p40_p6 = scmp.eq.s32.totalorder %s37_s27, 0  ;;  %p1219_p8 = scmp.lt.s32.totalorder %s1582_s23, 2 }
  0x10   : > { %p1669_p7 = por %p56_p5, %p55_p4  ;;  %s1678_s30 = sand.u32 1, %s1570_s20  }
  0x11   : > { %s1675_s29 = scalar_select %p40_p6, %s1570_s20, %s42_s26  }
  0x12   : > { %s1681_s6 = sshll.u32 %s1578_s22, 9  ;;  %p1687_p9 = pnand %p1219_p8, %p51_p3 }
  0x13   : > { %2110 = sst [smem:[#allocation13_spill]] %s1675_s29  ;;  %s239_s9 = scalar_lea.hbm %s2094_s0, %s1681_s6 }
  0x14   : > { %s250_s11 = sand.u32 1, %s1582_s23   ;;  %s2101_s12 = sshll.u32 %s1678_s30, 2 }
  0x15   : > { %s2112_s1 = sld [smem:[#allocation14_spill]]  ;;  %s254_s16 = scalar_lea.vmem [#allocation5], %s2101_s12 }
  0x16   : > { %s267_s17 = sshll.u32 %s254_s16, 4  ;;  %p1121_p10 = scmp.ge.s32.totalorder %s1582_s23, 1  ;;  %s268_s17 = int_to_ptr.vmem [resolvable:$true] %s267_s17 }
  0x17   : > { %s1700_s18 = scalar_lea.sflag [#allocation6], %s250_s11  ;;  %p1446_p11 = pneg %p1687_p9 }
  0x18   : > { %s1457_s26 = scalar_lea.vmem %s268_s17, 64  ;;  %s1584_s27 = smov [#allocation5]  }
  0x19   : > { %p1458_p12 = scmp.ne.s32.totalorder %s268_s17, %s1457_s26  ;;  %s1462_s7 = sshll.u32 %s1584_s27, 4  ;;  %s1463_s7 = int_to_ptr.vmem [resolvable:$false] %s1462_s7 }
  0x1a   : > { %s1464_s8 = scalar_lea.vmem %s1463_s7, 128  ;;  %p1465_p1 = scmp.lt.s32.totalorder %s268_s17, %s1463_s7 }
  0x1b   : > { %s265_s15 = scalar_lea.hbm %s2112_s1, %s1681_s6  ;;  %p1460_p13 = pnand %p1458_p12, %p1446_p11 }
  0x1c   : > { %p1466_p2 = scmp.lt.s32.totalorder %s1464_s8, %s1457_s26 }
  0x1d   : > { %p1461_p0 = pneg %p1460_p13 }
  0x1e   : > { %p1467_p3 = por %p1466_p2, %p1465_p1 }
  0x20   : > { %p1468_p4 = pnand %p1467_p3, %p1461_p0 }
  0x22   : > { %1471 = shalt.err (!%p1468_p4)
}
  0x23   : > { %1215 = dma.hbm_to_vmem [thread:$0]  (!%p1687_p9), %s265_s15, 64, %s268_s17, %s1700_s18  }
  0x24   : > { %p296_p5 = scmp.lt.s32.totalorder %s1582_s23, 3  ;;  %s1112_s13 = sshll.u32 %s1678_s30, 5 }
  0x25   : > { %s231_s14 = scalar_lea.vmem [#allocation3], %s1112_s13  ;;  %s1142_s26 = sadd.s32 448, %s1681_s6 }
  0x26   : > { %p1713_p6 = pnand %p1121_p10, %p296_p5  ;;  %s240_s16 = sshll.u32 %s231_s14, 4  ;;  %s241_s16 = int_to_ptr.vmem [resolvable:$true] %s240_s16 }
  0x27   : > { %s228_s27 = scalar_lea.sflag [#allocation4], %s1678_s30  ;;  %s1485_s7 = scalar_lea.vmem %s241_s16, 512 }
  0x28   : > { %p1486_p8 = scmp.ne.s32.totalorder %s241_s16, %s1485_s7  ;;  %s1585_s8 = smov [#allocation3]  }
  0x29   : > { %s1490_s15 = sshll.u32 %s1585_s8, 4  ;;  %s1491_s15 = int_to_ptr.vmem [resolvable:$false] %s1490_s15 }
  0x2a   : > { %p1488_p12 = pnand %p1486_p8, %p1446_p11  ;;  %s1492_s17 = scalar_lea.vmem %s1491_s15, 1024 }
  0x2b   : > { %p1493_p10 = scmp.lt.s32.totalorder %s241_s16, %s1491_s15  ;;  %p1494_p0 = scmp.lt.s32.totalorder %s1492_s17, %s1485_s7 }
  0x2c   : > { %p1489_p13 = pneg %p1488_p12 }
  0x2d   : > { %p1495_p1 = por %p1494_p0, %p1493_p10 }
  0x2f   : > { %p1496_p2 = pnand %p1495_p1, %p1489_p13 }
  0x31   : > { %1499 = shalt.err (!%p1496_p2)
}
  0x32   : > { %s1586_s13 = smov 64   ;;  %s1587_s14 = smov 4  }
  0x33   : > { %1212 = dma.hbm_to_vmem [thread:$0]  (!%p1687_p9), %s239_s9, 512, %s241_s16, %s228_s27, %s1586_s13, %s1586_s13, %s1587_s14  }
  0x34   : > { %s289_s15 = scalar_lea.hbm %s2096_s2, %s1142_s26  ;;  %s2114_s7 = sshll.u32 %s1678_s30, 2 }
  0x35   : > { %s278_s17 = scalar_lea.vmem [#allocation7], %s2114_s7  ;;  %s1588_s29 = smov [#allocation7]  }
  0x36   : > { %s291_s25 = sshll.u32 %s278_s17, 4  ;;  %s1518_s20 = sshll.u32 %s1588_s29, 4  ;;  %s292_s25 = int_to_ptr.vmem [resolvable:$true] %s291_s25  ;;  %s1519_s20 = int_to_ptr.vmem [resolvable:$false] %s1518_s20 }
  0x37   : > { %s1513_s22 = scalar_lea.vmem %s292_s25, 64  ;;  %s1520_s24 = scalar_lea.vmem %s1519_s20, 128 }
  0x38   : > { %p1514_p3 = scmp.ne.s32.totalorder %s292_s25, %s1513_s22  ;;  %p1521_p8 = scmp.lt.s32.totalorder %s292_s25, %s1519_s20 }
  0x39   : > { %p1522_p12 = scmp.lt.s32.totalorder %s1520_s24, %s1513_s22 }
  0x3a   : > { %p1516_p4 = pnand %p1514_p3, %p1446_p11 }
  0x3b   : > { %p1523_p13 = por %p1522_p12, %p1521_p8 }
  0x3c   : > { %p1517_p5 = pneg %p1516_p4 }
  0x3e   : > { %p1524_p10 = pnand %p1523_p13, %p1517_p5 }
  0x40   : > { %1527 = shalt.err (!%p1524_p10)
}
  0x41   : > { %1218 = dma.hbm_to_vmem [thread:$0]  (!%p1687_p9), %s289_s15, 64, %s292_s25, %s1700_s18  }
  0x42   : > { %300 = sbr.rel (%p1713_p6) target bundleno = 484 (0x1e4), region = 40  ;;  %s302_s1 = sand.u32 (!%p1713_p6), 1, %s1566_s19  }
  0x43   : > { %s1122_s30 = sshll.u32 (!%p1713_p6), %s302_s1, 5  ;;  %s303_s6 = scalar_lea.sflag (!%p1713_p6), [#allocation4], %s302_s1 }
  0x44   : > { %s1744_s29 = scalar_lea.vmem (!%p1713_p6), [#allocation3], %s1122_s30 }
  0x47   : > { %1553 = dma.done.wait (%p1669_p7), %s303_s6, 512  }
  0x48   : > { %1555 = vsyncadd (%p1669_p7), %s303_s6, 4294966784  ;;  %s2115_s20 = sadd.s32 4294967295, %s1582_s23  }
  0x49   : > { %s311_s22 = sand.u32 1, %s2115_s20  }
  0x4a   : > { %s312_s25 = scalar_lea.sflag [#allocation6], %s311_s22 }
  0x4b   : > { %1557 = dma.done.wait (%p1669_p7), %s312_s25, 128  }
  0x4c   : > { %1559 = vsyncadd (%p1669_p7), %s312_s25, 4294967168  ;;  %vm385_vm0 = vcmask 64512   ;;  %vm387_vm1 = vcmask 58368   ;;  %v1589_v0 = vmov 0.0   ;;  %v1162_v1 = vld [vmem:[%s1744_s29 + $0x10] sm:$0xff]   ;;  %v1145_v2 = vld [vmem:[%s1744_s29] sm:$0xff]  }
  0x4d   : > { %397 = vst.msk [vmem:[#allocation2 + $0x50] sm:$0xff] %vm385_vm0, %v1589_v0  ;;  %399 = vst.msk [vmem:[#allocation2 + $0x60] sm:$0xff] %vm385_vm0, %v1589_v0  ;;  %v1163_v3 = vld [vmem:[%s1744_s29 + $0x18] sm:$0xff]   ;;  %v1154_v4 = vunpack.c.l.bf16 %v1162_v1  ;;  %v1155_v5 = vunpack.c.h.bf16 %v1162_v1  ;;  %v1146_v6 = vunpack.c.l.bf16 %v1145_v2  ;;  %v1147_v7 = vunpack.c.h.bf16 %v1145_v2  ;;  %v1161_v8 = vld [vmem:[%s1744_s29 + $0x8] sm:$0xff]   ;;  %s1590_s28 = smov 24   ;;  %s1591_s9 = smov 8  }
  0x4e   : > { %398 = vst.msk [vmem:[#allocation2 + $0x58] sm:$0x3] %vm387_vm1, %v1589_v0  ;;  %400 = vst.msk [vmem:[#allocation2 + $0x68] sm:$0x3] %vm387_vm1, %v1589_v0  ;;  %v1158_v9 = vunpack.c.l.bf16 %v1163_v3  ;;  %v1159_v10 = vunpack.c.h.bf16 %v1163_v3  ;;  %v1150_v11 = vunpack.c.l.bf16 %v1161_v8  ;;  %v1151_v12 = vunpack.c.h.bf16 %v1161_v8  ;;  %s1592_s10 = smov 16   ;;  %s1593_s12 = smov 32  }
  0x4f   : > { %386 = vst.msk [vmem:[#allocation2] sm:$0xff] %vm385_vm0, %v1589_v0  ;;  %389 = vst.msk [vmem:[#allocation2 + $0x10] sm:$0xff] %vm385_vm0, %v1589_v0  ;;  %vm483_vm2 = vcmask 1046528   ;;  %vm532_vm3 = vcmask 1045504   ;;  %s1594_s16 = smov 40   ;;  %vm872_vm4 = vcmask 1043456  }
  0x50   : > { %388 = vst.msk [vmem:[#allocation2 + $0x8] sm:$0x3] %vm387_vm1, %v1589_v0  ;;  %390 = vst.msk [vmem:[#allocation2 + $0x18] sm:$0x3] %vm387_vm1, %v1589_v0  ;;  %s1595_s8 = smov 48   ;;  %s1596_s1 = smov 56  }
  0x51   : > { %391 = vst.msk [vmem:[#allocation2 + $0x20] sm:$0xff] %vm385_vm0, %v1589_v0  ;;  %393 = vst.msk [vmem:[#allocation2 + $0x30] sm:$0xff] %vm385_vm0, %v1589_v0  ;;  %s1597_s30 = smov 64   ;;  %vm749_vm5 = vcmask 130048   ;;  %vm758_vm6 = vcmask 195584   ;;  %vm767_vm7 = vcmask 261120  }
  0x52   : > { %392 = vst.msk [vmem:[#allocation2 + $0x28] sm:$0x3] %vm387_vm1, %v1589_v0  ;;  %394 = vst.msk [vmem:[#allocation2 + $0x38] sm:$0x3] %vm387_vm1, %v1589_v0  ;;  %vm776_vm8 = vcmask 326656   ;;  %vm785_vm9 = vcmask 392192  }
  0x53   : > { %395 = vst.msk [vmem:[#allocation2 + $0x40] sm:$0xff] %vm385_vm0, %v1589_v0  ;;  %401 = vst.msk [vmem:[#allocation2 + $0x70] sm:$0xff] %vm385_vm0, %v1589_v0  ;;  %vm794_vm10 = vcmask 457728   ;;  %vm803_vm11 = vcmask 523264   ;;  %vm859_vm12 = vcmask 588800   ;;  %p375_p7 = scmp.lt.s32.totalorder %s1574_s21, 1 }
  0x54   : > { %396 = vst.msk [vmem:[#allocation2 + $0x48] sm:$0x3] %vm387_vm1, %v1589_v0  ;;  %402 = vst.msk [vmem:[#allocation2 + $0x78] sm:$0x3] %vm387_vm1, %v1589_v0  ;;  %vm957_vm13 = vcmask 27648  }
  0x55   : > { %403 = vst.msk [vmem:[#allocation2 + $0x80] sm:$0xff] %vm385_vm0, %v1589_v0  ;;  %405 = vst.msk [vmem:[#allocation2 + $0x90] sm:$0xff] %vm385_vm0, %v1589_v0  ;;  %s2126_s21 = smov (!%p375_p7, %s1574_s21), 1 }
  0x56   : > { %404 = vst.msk [vmem:[#allocation2 + $0x88] sm:$0x3] %vm387_vm1, %v1589_v0  ;;  %406 = vst.msk [vmem:[#allocation2 + $0x98] sm:$0x3] %vm387_vm1, %v1589_v0  ;;  %v1788_v13 = vld [vmem:[#allocation2] sm:$0xff]  ;;  %s1143_s20 = sshll.u32 %s2126_s21, 5 }
  0x57   : > { %428 = vst.msk [vmem:[#allocation2 + $0x51] sm:$0xff] %vm385_vm0, %v1154_v4  ;;  %429 = vst.msk [vmem:[#allocation2 + $0x61] sm:$0xff] %vm385_vm0, %v1155_v5  ;;  %v448_v14 = vld [vmem:[#allocation2 + $0x8] sm:$0x3]  ;;  %v484_v15 = vrot.slane %v1788_v13, 1  ;;  %v533_v20 = vrot.slane %v1788_v13, 2 }
  0x58   : > { %424 = vst.msk [vmem:[#allocation2 + $0x11] sm:$0xff] %vm385_vm0, %v1146_v6  ;;  %425 = vst.msk [vmem:[#allocation2 + $0x21] sm:$0xff] %vm385_vm0, %v1147_v7  ;;  %v485_v19 = vrot.slane %v448_v14, 1  ;;  %v534_v21 = vrot.slane %v448_v14, 2 }
  0x59   : > { %430 = vst.msk [vmem:[#allocation2 + $0x71] sm:$0xff] %vm385_vm0, %v1158_v9  ;;  %431 = vst.msk [vmem:[#allocation2 + $0x81] sm:$0xff] %vm385_vm0, %v1159_v10 }
  0x5a   : > { %426 = vst.msk [vmem:[#allocation2 + $0x31] sm:$0xff] %vm385_vm0, %v1150_v11  ;;  %427 = vst.msk [vmem:[#allocation2 + $0x41] sm:$0xff] %vm385_vm0, %v1151_v12  ;;  %v486_v42 = vsel %vm483_vm2, %v484_v15, %v485_v19  ;;  %v535_v3 = vsel %vm532_vm3, %v533_v20, %v534_v21 }
  0x5e   : > { %v1791_v16 = vld [vmem:[#allocation2 + $0x50] sm:$0xff]  ;;  %v1793_v17 = vld [vmem:[#allocation2 + $0x60] sm:$0xff]  ;;  %v460_v44 = vld [vmem:[#allocation2 + $0x68] sm:$0x3] }
  0x5f   : > { %v1795_v18 = vld [vmem:[#allocation2 + $0x10] sm:$0xff]  ;;  %v1284_v22 = vpack.i.bf16 %v1793_v17, %v1791_v16  ;;  %v1800_v23 = vld [vmem:[#allocation2 + $0x20] sm:$0xff]  ;;  %v502_v27 = vrot.slane %v1793_v17, 1  ;;  %v499_v28 = vrot.slane %v1791_v16, 1  ;;  %v1815_v32 = vld [vmem:[#allocation2 + $0x28] sm:$0x3] }
  0x60   : > { %v1802_v24 = vld [vmem:[#allocation2 + $0x70] sm:$0xff]  ;;  %v1804_v25 = vld [vmem:[#allocation2 + $0x80] sm:$0xff]  ;;  %v487_v26 = vrot.slane %v1795_v18, 1  ;;  %v1279_v29 = vpack.i.bf16 %v1800_v23, %v1795_v18  ;;  %v490_v33 = vrot.slane %v1800_v23, 1  ;;  %v491_v37 = vrot.slane %v1815_v32, 1 }
  0x61   : > { %v1811_v30 = vld [vmem:[#allocation2 + $0x30] sm:$0xff]  ;;  %v1813_v31 = vld [vmem:[#allocation2 + $0x40] sm:$0xff]  ;;  %v505_v34 = vrot.slane %v1802_v24, 1  ;;  %1285 = vrot.lane.b32.xlu1 %v1284_v22, %s1590_s28  ;;  %v1294_v35 = vpack.i.bf16 %v1804_v25, %v1802_v24  ;;  %v454_v36 = vld [vmem:[#allocation2 + $0x38] sm:$0x3]  ;;  %v503_v47 = vrot.slane %v460_v44, 1 }
  0x62   : > { %v493_v38 = vrot.slane %v1811_v30, 1  ;;  %v450_v39 = vld [vmem:[#allocation2 + $0x18] sm:$0x3]  ;;  %1280 = vrot.lane.b32.xlu0 %v1279_v29, %s1590_s28  ;;  %v1289_v40 = vpack.i.bf16 %v1813_v31, %v1811_v30  ;;  %v494_v41 = vrot.slane %v454_v36, 1  ;;  %v1827_v46 = vsel %vm483_vm2, %v490_v33, %v491_v37  ;;  %v456_v49 = vld [vmem:[#allocation2 + $0x48] sm:$0x3] }
  0x63   : > { %v488_v43 = vrot.slane %v450_v39, 1  ;;  %v462_v45 = vld [vmem:[#allocation2 + $0x78] sm:$0x3]  ;;  %v496_v53 = vrot.slane %v1813_v31, 1  ;;  %v497_v54 = vrot.slane %v456_v49, 1  ;;  %v504_v57 = vsel %vm483_vm2, %v502_v27, %v503_v47 }
  0x64   : > { %v506_v48 = vrot.slane %v462_v45, 1  ;;  %v458_v50 = vld [vmem:[#allocation2 + $0x58] sm:$0x3]  ;;  %v1830_v51 = vsel %vm483_vm2, %v493_v38, %v494_v41  ;;  %v545_v61 = vrot.slane %v1813_v31, 2  ;;  %v546_v62 = vrot.slane %v456_v49, 2 }
  0x65   : > { %v489_v52 = vsel %vm483_vm2, %v487_v26, %v488_v43  ;;  %1295 = vrot.lane.b32.xlu1 %v1294_v35, %s1590_s28  ;;  %v1836_v55 = vpack.i.bf16 %v1830_v51, %v1827_v46  ;;  %v498_v59 = vsel %vm483_vm2, %v496_v53, %v497_v54  ;;  %v500_v60 = vrot.slane %v458_v50, 1 }
  0x66   : > { %v1299_v56 = vpack.i.bf16 %v489_v52, %v486_v42  ;;  %1290 = vrot.lane.b32.xlu0 %v1289_v40, %s1590_s28  ;;  %v507_v58 = vsel %vm483_vm2, %v505_v34, %v506_v48  ;;  %v548_v63 = vrot.slane %v1791_v16, 2  ;;  %v549_v0 = vrot.slane %v458_v50, 2  ;;  %v464_v34 = vld [vmem:[#allocation2 + $0x88] sm:$0x3]  ;;  %s2058_s28 = scalar_lea.vmem %s2099_s5, %s1143_s20 }
  0x67   : > { %v536_v1 = vrot.slane %v1795_v18, 2  ;;  %v501_v2 = vsel %vm483_vm2, %v499_v28, %v500_v60  ;;  %v537_v4 = vrot.slane %v450_v39, 2  ;;  %v1847_v5 = vpack.i.bf16 %v507_v58, %v504_v57 }
  0x68   : > { %v1849_v6 = vpack.i.bf16 %v501_v2, %v498_v59  ;;  %v551_v7 = vrot.slane %v1793_v17, 2  ;;  %v552_v8 = vrot.slane %v460_v44, 2  ;;  %v547_v9 = vsel %vm532_vm3, %v545_v61, %v546_v62 }
  0x69   : > { %1310 = vrot.lane.b32.xlu1 %v1836_v55, %s1591_s9  ;;  %v550_v10 = vsel %vm532_vm3, %v548_v63, %v549_v0  ;;  %v554_v11 = vrot.slane %v1802_v24, 2  ;;  %v555_v12 = vrot.slane %v462_v45, 2  ;;  %v538_v14 = vsel %vm532_vm3, %v536_v1, %v537_v4  ;;  %v1442_v63 = vld [vmem:[%s2097_s3 + $0x8] sm:$0xff]  }
  0x6a   : > { %1300 = vrot.lane.b32.xlu0 %v1299_v56, %s1591_s9  ;;  %v539_v15 = vrot.slane %v1800_v23, 2  ;;  %v540_v19 = vrot.slane %v1815_v32, 2  ;;  %v542_v20 = vrot.slane %v1811_v30, 2  ;;  %v543_v21 = vrot.slane %v454_v36, 2  ;;  %v465_v56 = vld [vmem:[#allocation2 + $0x90] sm:$0xff] }
  0x6b   : > { %v1860_v22 = vpack.i.bf16 %v550_v10, %v547_v9  ;;  %v1319_v26 = vpack.i.bf16 %v538_v14, %v535_v3  ;;  %v553_v27 = vsel %vm532_vm3, %v551_v7, %v552_v8  ;;  %v556_v28 = vsel %vm532_vm3, %v554_v11, %v555_v12 }
  0x6c   : > { %v541_v29 = vsel %vm532_vm3, %v539_v15, %v540_v19  ;;  %v544_v33 = vsel %vm532_vm3, %v542_v20, %v543_v21  ;;  %v1868_v32 = vpack.i.bf16 %v556_v28, %v553_v27  ;;  %v607_v36 = vrot.slane %v1804_v25, 1 }
  0x6d   : > { %1315 = vrot.lane.b32.xlu1 %v1847_v5, %s1591_s9  ;;  %v1870_v35 = vpack.i.bf16 %v544_v33, %v541_v29  ;;  %v608_v37 = vrot.slane %v464_v34, 1  ;;  %v1344_v38 = vpack.i.bf16 %v504_v57, %v501_v2  ;;  %v1339_v39 = vpack.i.bf16 %v1827_v46, %v489_v52  ;;  %v1439_v46 = vld [vmem:[%s2097_s3 + $0x20] ss:$0 sps:$4 sm:$0xff]   ;;  %v1440_v52 = vld [vmem:[%s2097_s3 + $0x18] sm:$0xff]  }
  0x6e   : > { %1305 = vrot.lane.b32.xlu0 %v1849_v6, %s1591_s9  ;;  %v1349_v42 = vpack.i.bf16 %v498_v59, %v1830_v51  ;;  %v634_v43 = vrot.slane %v1804_v25, 2  ;;  %v635_v44 = vrot.slane %v464_v34, 2  ;;  %v1364_v45 = vpack.i.bf16 %v553_v27, %v550_v10  ;;  %1201 = vmatprep.subr.msk.bf16.mxu0 %vm872_vm4, %v1439_v46  ;;  %v466_v57 = vld [vmem:[#allocation2 + $0x98] sm:$0x3] }
  0x6f   : > { %v1877_v40 = vsel %vm483_vm2, %v607_v36, %v608_v37  ;;  %v1359_v47 = vpack.i.bf16 %v541_v29, %v538_v14  ;;  %v1369_v50 = vpack.i.bf16 %v547_v9, %v544_v33  ;;  %v874_v51 = vsel %vm872_vm4, %v1439_v46, 0  ;;  %1202 = vmatprep.subr.msk.bf16.mxu1 %vm872_vm4, %v1439_v46 }
  0x70   : > { %v1354_v41 = vpack.i.bf16 %v1877_v40, %v507_v58  ;;  %v636_v48 = vsel %vm532_vm3, %v634_v43, %v635_v44  ;;  %1174 = vmatpush3.bf16.msra.mxu0 %v874_v51  ;;  %1196 = vmatpush3.bf16.msra.mxu1 %v874_v51  ;;  %v1384_v53 = vpack.i.bf16 %v1802_v24, %v1793_v17  ;;  %v1441_v58 = vld [vmem:[%s2097_s3 + $0x10] sm:$0xff]   ;;  %v687_v60 = vrot.slane %v465_v56, 1 }
  0x71   : > { %1325 = vrot.lane.b32.xlu1 %v1860_v22, %s1592_s10  ;;  %v1374_v49 = vpack.i.bf16 %v636_v48, %v556_v28  ;;  %v1379_v54 = vpack.i.bf16 %v1811_v30, %v1800_v23  ;;  %1175 = vmatprep.subr.bf16.mxu0 %v1440_v52  ;;  %v1394_v59 = vpack.i.bf16 %v465_v56, %v1804_v25  ;;  %v688_v62 = vrot.slane %v466_v57, 1  ;;  %v1443_v25 = vld [vmem:[%s2097_s3] sm:$0xff]  }
  0x72   : > { %1320 = vrot.lane.b32.xlu0 %v1319_v26, %s1592_s10  ;;  %1192 = vmatprep.subr.bf16.mxu1 %v1440_v52  ;;  %v1389_v61 = vpack.i.bf16 %v1791_v16, %v1813_v31  ;;  %v714_v2 = vrot.slane %v465_v56, 2  ;;  %v715_v3 = vrot.slane %v466_v57, 2 }
  0x73   : > { %v689_v0 = vsel %vm483_vm2, %v687_v60, %v688_v62 }
  0x74   : > { %1176 = vmatpush3.bf16.msra.mxu0 %v1440_v52  ;;  %1197 = vmatpush3.bf16.msra.mxu1 %v1440_v52  ;;  %v1414_v1 = vpack.i.bf16 %v689_v0, %v1877_v40  ;;  %v716_v4 = vsel %vm532_vm3, %v714_v2, %v715_v3 }
  0x75   : > { %1335 = vrot.lane.b32.xlu1 %v1868_v32, %s1592_s10  ;;  %1177 = vmatprep.subr.bf16.mxu0 %v1441_v58  ;;  %v1434_v7 = vpack.i.bf16 %v716_v4, %v636_v48 }
  0x76   : > { %1330 = vrot.lane.b32.xlu0 %v1870_v35, %s1592_s10  ;;  %1193 = vmatprep.subr.bf16.mxu1 %v1441_v58 }
  0x78   : > { %1178 = vmatpush3.bf16.msra.mxu0 %v1441_v58  ;;  %1198 = vmatpush3.bf16.msra.mxu1 %v1441_v58 }
  0x79   : > { %1345 = vrot.lane.b32.xlu1 %v1344_v38, %s1593_s12  ;;  %1179 = vmatprep.subr.bf16.mxu0 %v1442_v63 }
  0x7a   : > { %1340 = vrot.lane.b32.xlu0 %v1339_v39, %s1593_s12  ;;  %1194 = vmatprep.subr.bf16.mxu1 %v1442_v63 }
  0x7c   : > { %1180 = vmatpush3.bf16.msra.mxu0 %v1442_v63  ;;  %1199 = vmatpush3.bf16.msra.mxu1 %v1442_v63 }
  0x7d   : > { %1355 = vrot.lane.b32.xlu1 %v1354_v41, %s1593_s12  ;;  %1181 = vmatprep.subr.bf16.mxu0 %v1443_v25 }
  0x7e   : > { %1350 = vrot.lane.b32.xlu0 %v1349_v42, %s1593_s12  ;;  %1195 = vmatprep.subr.bf16.mxu1 %v1443_v25 }
  0x80   : > { %1182 = vmatpush3.bf16.msra.mxu0 %v1443_v25  ;;  %1200 = vmatpush3.bf16.msra.mxu1 %v1443_v25 }
  0x81   : > { %1365 = vrot.lane.b32.xlu1 %v1364_v45, %s1594_s16 }
  0x82   : > { %1360 = vrot.lane.b32.xlu0 %v1359_v47, %s1594_s16 }
  0x85   : > { %1375 = vrot.lane.b32.xlu1 %v1374_v49, %s1594_s16 }
  0x86   : > { %1370 = vrot.lane.b32.xlu0 %v1369_v50, %s1594_s16 }
  0x89   : > { %1385 = vrot.lane.b32.xlu1 %v1384_v53, %s1595_s8 }
  0x8a   : > { %1380 = vrot.lane.b32.xlu0 %v1379_v54, %s1595_s8 }
  0x8d   : > { %1395 = vrot.lane.b32.xlu1 %v1394_v59, %s1595_s8 }
  0x8e   : > { %1390 = vrot.lane.b32.xlu0 %v1389_v61, %s1595_s8 }
  0x91   : > { %1405 = vrot.lane.b32.xlu1 %v1847_v5, %s1596_s1 }
  0x92   : > { %1400 = vrot.lane.b32.xlu0 %v1836_v55, %s1596_s1 }
  0x95   : > { %1415 = vrot.lane.b32.xlu1 %v1414_v1, %s1596_s1 }
  0x96   : > { %1410 = vrot.lane.b32.xlu0 %v1849_v6, %s1596_s1 }
  0x99   : > { %1425 = vrot.lane.b32.xlu1 %v1868_v32, %s1597_s30 }
  0x9a   : > { %1420 = vrot.lane.b32.xlu0 %v1870_v35, %s1597_s30 }
  0x9d   : > { %1435 = vrot.lane.b32.xlu1 %v1434_v7, %s1597_s30 }
  0x9e   : > { %1430 = vrot.lane.b32.xlu0 %v1860_v22, %s1597_s30 }
  0xd3   : > { %v1914_v55 = vpop.permute.xlu1 %1285 }
  0xd4   : > { %v1916_v5 = vpop.permute.xlu0 %1280  ;;  %v1288_v28 = vunpack.i.h.bf16 %v1914_v55  ;;  %v1287_v29 = vunpack.i.l.bf16 %v1914_v55 }
  0xd5   : > { %v1283_v40 = vunpack.i.h.bf16 %v1916_v5  ;;  %v1282_v41 = vunpack.i.l.bf16 %v1916_v5 }
  0xd7   : > { %v1918_v8 = vpop.permute.xlu1 %1295 }
  0xd8   : > { %v1920_v9 = vpop.permute.xlu0 %1290  ;;  %v1298_v44 = vunpack.i.h.bf16 %v1918_v8  ;;  %v1297_v45 = vunpack.i.l.bf16 %v1918_v8 }
  0xd9   : > { %v1293_v61 = vunpack.i.h.bf16 %v1920_v9 }
  0xdb   : > { %v1311_v6 = vpop.permute.xlu1 %1310 }
  0xdc   : > { %v1301_v10 = vpop.permute.xlu0 %1300  ;;  %v1313_v47 = vunpack.i.h.bf16 %v1311_v6  ;;  %v1312_v48 = vunpack.i.l.bf16 %v1311_v6 }
  0xdd   : > { %v1303_v35 = vunpack.i.h.bf16 %v1301_v10  ;;  %v1302_v36 = vunpack.i.l.bf16 %v1301_v10 }
  0xde   : > { %v743_v0 = vsel %vm385_vm0, %v1800_v23, %v1312_v48 }
  0xdf   : > { %v1316_v11 = vpop.permute.xlu1 %1315  ;;  %v742_v53 = vsel %vm385_vm0, %v1795_v18, %v1303_v35  ;;  %v741_v54 = vsel %vm385_vm0, %v1788_v13, %v1302_v36  ;;  %v1292_v18 = vunpack.i.l.bf16 %v1920_v9  ;;  %v744_v13 = vsel %vm385_vm0, %v1811_v30, %v1313_v47 }
  0xe0   : > { %v1306_v12 = vpop.permute.xlu0 %1305  ;;  %v1318_v46 = vunpack.i.h.bf16 %v1316_v11  ;;  %v1317_v49 = vunpack.i.l.bf16 %v1316_v11 }
  0xe1   : > { %v1308_v33 = vunpack.i.h.bf16 %v1306_v12  ;;  %v1307_v34 = vunpack.i.l.bf16 %v1306_v12 }
  0xe2   : > { %v748_v25 = vsel %vm385_vm0, %v1802_v24, %v1318_v46  ;;  %v747_v1 = vsel %vm385_vm0, %v1793_v17, %v1317_v49 }
  0xe3   : > { %v1326_v14 = vpop.permute.xlu1 %1325  ;;  %v746_v50 = vsel %vm385_vm0, %v1791_v16, %v1308_v33  ;;  %v745_v51 = vsel %vm385_vm0, %v1813_v31, %v1307_v34 }
  0xe4   : > { %v1321_v15 = vpop.permute.xlu0 %1320  ;;  %v1328_v37 = vunpack.i.h.bf16 %v1326_v14  ;;  %v1327_v38 = vunpack.i.l.bf16 %v1326_v14 }
  0xe5   : > { %v1323_v42 = vunpack.i.h.bf16 %v1321_v15  ;;  %v1322_v43 = vunpack.i.l.bf16 %v1321_v15 }
  0xe6   : > { %v754_v56 = vsel %vm749_vm5, %v745_v51, %v1327_v38  ;;  %v755_v57 = vsel %vm749_vm5, %v746_v50, %v1328_v37 }
  0xe7   : > { %v1336_v19 = vpop.permute.xlu1 %1335  ;;  %v750_v59 = vsel %vm749_vm5, %v741_v54, %v1322_v43  ;;  %v751_v16 = vsel %vm749_vm5, %v742_v53, %v1323_v42  ;;  %v763_v3 = vsel %vm758_vm6, %v754_v56, %v1287_v29  ;;  %v764_v4 = vsel %vm758_vm6, %v755_v57, %v1288_v28 }
  0xe8   : > { %v1331_v20 = vpop.permute.xlu0 %1330  ;;  %v1338_v60 = vunpack.i.h.bf16 %v1336_v19  ;;  %v1337_v31 = vunpack.i.l.bf16 %v1336_v19  ;;  %v759_v7 = vsel %vm758_vm6, %v750_v59, %v1282_v41  ;;  %v760_v55 = vsel %vm758_vm6, %v751_v16, %v1283_v40 }
  0xe9   : > { %v1333_v62 = vunpack.i.h.bf16 %v1331_v20  ;;  %v1332_v63 = vunpack.i.l.bf16 %v1331_v20 }
  0xea   : > { %v756_v23 = vsel %vm749_vm5, %v747_v1, %v1337_v31  ;;  %v757_v5 = vsel %vm749_vm5, %v748_v25, %v1338_v60 }
  0xeb   : > { %v1922_v21 = vpop.permute.xlu1 %1345  ;;  %v753_v8 = vsel %vm749_vm5, %v744_v13, %v1333_v62  ;;  %v752_v9 = vsel %vm749_vm5, %v743_v0, %v1332_v63  ;;  %v765_v20 = vsel %vm758_vm6, %v756_v23, %v1297_v45 }
  0xec   : > { %v1924_v26 = vpop.permute.xlu0 %1340  ;;  %v1348_v24 = vunpack.i.h.bf16 %v1922_v21  ;;  %v1347_v17 = vunpack.i.l.bf16 %v1922_v21  ;;  %v766_v21 = vsel %vm758_vm6, %v757_v5, %v1298_v44  ;;  %v761_v34 = vsel %vm758_vm6, %v752_v9, %v1292_v18 }
  0xed   : > { %v1343_v6 = vunpack.i.h.bf16 %v1924_v26  ;;  %v1342_v10 = vunpack.i.l.bf16 %v1924_v26 }
  0xee   : > { %v772_v26 = vsel %vm767_vm7, %v763_v3, %v1347_v17 }
  0xef   : > { %v1926_v22 = vpop.permute.xlu1 %1355  ;;  %v768_v35 = vsel %vm767_vm7, %v759_v7, %v1342_v10  ;;  %v769_v36 = vsel %vm767_vm7, %v760_v55, %v1343_v6 }
  0xf0   : > { %v1928_v27 = vpop.permute.xlu0 %1350  ;;  %v1358_v11 = vunpack.i.h.bf16 %v1926_v22  ;;  %v1357_v12 = vunpack.i.l.bf16 %v1926_v22  ;;  %v773_v22 = vsel %vm767_vm7, %v764_v4, %v1348_v24 }
  0xf1   : > { %v1353_v14 = vunpack.i.h.bf16 %v1928_v27  ;;  %v1352_v15 = vunpack.i.l.bf16 %v1928_v27  ;;  %v762_v27 = vsel %vm758_vm6, %v753_v8, %v1293_v61 }
  0xf2   : > { %v775_v40 = vsel %vm767_vm7, %v766_v21, %v1358_v11 }
  0xf3   : > { %v1932_v32 = vpop.permute.xlu1 %1365  ;;  %v770_v41 = vsel %vm767_vm7, %v761_v34, %v1352_v15  ;;  %v771_v42 = vsel %vm767_vm7, %v762_v27, %v1353_v14 }
  0xf4   : > { %v1934_v39 = vpop.permute.xlu0 %1360  ;;  %v1368_v28 = vunpack.i.h.bf16 %v1932_v32  ;;  %v1367_v29 = vunpack.i.l.bf16 %v1932_v32  ;;  %v774_v32 = vsel %vm767_vm7, %v765_v20, %v1357_v12 }
  0xf5   : > { %v1363_v37 = vunpack.i.h.bf16 %v1934_v39  ;;  %v1362_v38 = vunpack.i.l.bf16 %v1934_v39 }
  0xf6   : > { %v781_v44 = vsel %vm776_vm8, %v772_v26, %v1367_v29  ;;  %v782_v45 = vsel %vm776_vm8, %v773_v22, %v1368_v28 }
  0xf7   : > { %v1944_v52 = vpop.permute.xlu1 %1375  ;;  %v777_v53 = vsel %vm776_vm8, %v768_v35, %v1362_v38  ;;  %v778_v54 = vsel %vm776_vm8, %v769_v36, %v1363_v37 }
  0xf8   : > { %v1952_v58 = vpop.permute.xlu0 %1370  ;;  %v1378_v47 = vunpack.i.h.bf16 %v1944_v52  ;;  %v1377_v48 = vunpack.i.l.bf16 %v1944_v52 }
  0xf9   : > { %v1373_v39 = vunpack.i.h.bf16 %v1952_v58  ;;  %v1372_v49 = vunpack.i.l.bf16 %v1952_v58 }
  0xfa   : > { %v783_v58 = vsel %vm776_vm8, %v774_v32, %v1377_v48  ;;  %v784_v61 = vsel %vm776_vm8, %v775_v40, %v1378_v47 }
  0xfb   : > { %v1966_v2 = vpop.permute.xlu1 %1385  ;;  %v779_v13 = vsel %vm776_vm8, %v770_v41, %v1372_v49  ;;  %v780_v0 = vsel %vm776_vm8, %v771_v42, %v1373_v39 }
  0xfc   : > { %v1972_v30 = vpop.permute.xlu0 %1380  ;;  %v1388_v50 = vunpack.i.h.bf16 %v1966_v2  ;;  %v1387_v51 = vunpack.i.l.bf16 %v1966_v2 }
  0xfd   : > { %v1383_v56 = vunpack.i.h.bf16 %v1972_v30  ;;  %v1382_v57 = vunpack.i.l.bf16 %v1972_v30 }
  0xfe   : > { %v790_v25 = vsel %vm785_vm9, %v781_v44, %v1387_v51  ;;  %v791_v1 = vsel %vm785_vm9, %v782_v45, %v1388_v50  ;;  %v1127_v50 = vld [vmem:[%s2098_s4] ss:$0 sm:$0xff] }
  0xff   : > { %v1396_v19 = vpop.permute.xlu1 %1395  ;;  %v786_v2 = vsel %vm785_vm9, %v777_v53, %v1382_v57  ;;  %v787_v3 = vsel %vm785_vm9, %v778_v54, %v1383_v56 }
 0x100   : > { %v1990_v33 = vpop.permute.xlu0 %1390  ;;  %v1398_v59 = vunpack.i.h.bf16 %v1396_v19  ;;  %v1397_v52 = vunpack.i.l.bf16 %v1396_v19 }
 0x101   : > { %v1393_v4 = vunpack.i.h.bf16 %v1990_v33  ;;  %v1392_v7 = vunpack.i.l.bf16 %v1990_v33 }
 0x102   : > { %v792_v55 = vsel %vm785_vm9, %v783_v58, %v1397_v52  ;;  %v793_v30 = vsel %vm785_vm9, %v784_v61, %v1398_v59 }
 0x103   : > { %v1406_v43 = vpop.permute.xlu1 %1405  ;;  %v788_v29 = vsel %vm785_vm9, %v779_v13, %v1392_v7  ;;  %v789_v27 = vsel %vm785_vm9, %v780_v0, %v1393_v4 }
 0x104   : > { %v1401_v46 = vpop.permute.xlu0 %1400  ;;  %v1408_v16 = vunpack.i.h.bf16 %v1406_v43  ;;  %v1407_v60 = vunpack.i.l.bf16 %v1406_v43 }
 0x105   : > { %v1403_v18 = vunpack.i.h.bf16 %v1401_v46  ;;  %v1402_v62 = vunpack.i.l.bf16 %v1401_v46 }
 0x106   : > { %v799_v5 = vsel %vm794_vm10, %v790_v25, %v1407_v60  ;;  %v800_v24 = vsel %vm794_vm10, %v791_v1, %v1408_v16 }
 0x107   : > { %v1416_v31 = vpop.permute.xlu1 %1415  ;;  %v795_v6 = vsel %vm794_vm10, %v786_v2, %v1402_v62  ;;  %v796_v10 = vsel %vm794_vm10, %v787_v3, %v1403_v18 }
 0x108   : > { %v1411_v63 = vpop.permute.xlu0 %1410  ;;  %v1418_v11 = vunpack.i.h.bf16 %v1416_v31  ;;  %v1417_v12 = vunpack.i.l.bf16 %v1416_v31 }
 0x109   : > { %v1413_v19 = vunpack.i.h.bf16 %v1411_v63  ;;  %v1412_v20 = vunpack.i.l.bf16 %v1411_v63 }
 0x10a   : > { %v801_v32 = vsel %vm794_vm10, %v792_v55, %v1417_v12  ;;  %v802_v40 = vsel %vm794_vm10, %v793_v30, %v1418_v11 }
 0x10b   : > { %v1426_v23 = vpop.permute.xlu1 %1425  ;;  %v797_v43 = vsel %vm794_vm10, %v788_v29, %v1412_v20  ;;  %v798_v44 = vsel %vm794_vm10, %v789_v27, %v1413_v19 }
 0x10c   : > { %v1428_v17 = vunpack.i.h.bf16 %v1426_v23  ;;  %v1427_v8 = vunpack.i.l.bf16 %v1426_v23  ;;  %v1421_v9 = vpop.permute.xlu0 %1420 }
 0x10d   : > { %v1423_v14 = vunpack.i.h.bf16 %v1421_v9  ;;  %v1422_v15 = vunpack.i.l.bf16 %v1421_v9 }
 0x10e   : > { %v808_v21 = vsel %vm803_vm11, %v799_v5, %v1427_v8  ;;  %v809_v28 = vsel %vm803_vm11, %v800_v24, %v1428_v17 }
 0x10f   : > { %v1436_v33 = vpop.permute.xlu1 %1435  ;;  %v804_v26 = vsel %vm803_vm11, %v795_v6, %v1422_v15  ;;  %v805_v22 = vsel %vm803_vm11, %v796_v10, %v1423_v14  ;;  %v814_v34 = vpack.c.bf16 %v809_v28, %v808_v21 }
 0x110   : > { %v1438_v35 = vunpack.i.h.bf16 %v1436_v33  ;;  %v1437_v36 = vunpack.i.l.bf16 %v1436_v33  ;;  %v1431_v37 = vpop.permute.xlu0 %1430  ;;  %v812_v38 = vpack.c.bf16 %v805_v22, %v804_v26 }
 0x111   : > { %v1433_v41 = vunpack.i.h.bf16 %v1431_v37  ;;  %v1432_v42 = vunpack.i.l.bf16 %v1431_v37  ;;  %1187 = vmatprep.mubr.msk.bf16.mxu1 %vm859_vm12, %v814_v34 }
 0x112   : > { %v810_v45 = vsel %vm803_vm11, %v801_v32, %v1437_v36  ;;  %v811_v47 = vsel %vm803_vm11, %v802_v40, %v1438_v35  ;;  %1183 = vmatprep.mubr.msk.bf16.mxu0 %vm859_vm12, %v812_v38 }
 0x113   : > { %v815_v48 = vpack.c.bf16 %v811_v47, %v810_v45  ;;  %v806_v46 = vsel %vm803_vm11, %v797_v43, %v1432_v42  ;;  %v807_v39 = vsel %vm803_vm11, %v798_v44, %v1433_v41 }
 0x114   : > { %v813_v49 = vpack.c.bf16 %v807_v39, %v806_v46 }
 0x115   : > { %1188 = vmatmul.mubr.msk.bf16.vlgmr.msra.gmra.mxu1 %vm859_vm12, %v815_v48 }
 0x116   : > { %1184 = vmatmul.mubr.msk.bf16.vlgmr.msra.gmra.mxu0 %vm859_vm12, %v813_v49 }
 0x1d5   : > { %v1189_v51 = vpop.f32.mrf.mxu1 }
 0x1d6   : > { %v1185_v53 = vpop.f32.mrf.mxu0  ;;  %v935_v54 = vadd.f32 %v1189_v51, %v1127_v50 }
 0x1d7   : > { %v919_v56 = vadd.f32 %v1185_v53, %v1127_v50  ;;  %v926_v57 = vpop.f32.mrf.mxu1 }
 0x1d8   : > { %v947_v59 = vmax.f32 %v935_v54, 0.0  ;;  %v910_v52 = vpop.f32.mrf.mxu0  ;;  %v927_v16 = vadd.f32 %v1127_v50, %v926_v57 }
 0x1d9   : > { %v943_v60 = vmax.f32 %v919_v56, 0.0  ;;  %v911_v31 = vadd.f32 %v1127_v50, %v910_v52  ;;  %v1190_v58 = vpop.f32.mrf.mxu1 }
 0x1da   : > { %v955_v61 = vpack.c.bf16 %v947_v59, %v947_v59  ;;  %v945_v18 = vmax.f32 %v927_v16, 0.0  ;;  %v1186_v62 = vpop.f32.mrf.mxu0  ;;  %v938_v63 = vadd.f32 %v1190_v58, %v1127_v50 }
 0x1db   : > { %v951_v13 = vpack.c.bf16 %v943_v60, %v943_v60  ;;  %v941_v0 = vmax.f32 %v911_v31, 0.0  ;;  %v922_v25 = vadd.f32 %v1186_v62, %v1127_v50  ;;  %v929_v1 = vpop.f32.mrf.mxu1 }
 0x1dc   : > { %964 = vst.msk [vmem:[%s2058_s28 + $0x18] sm:$0xf] %vm957_vm13, %v955_v61  ;;  %v953_v2 = vpack.c.bf16 %v945_v18, %v945_v18  ;;  %v948_v3 = vmax.f32 %v938_v63, 0.0  ;;  %v913_v4 = vpop.f32.mrf.mxu0  ;;  %v930_v7 = vadd.f32 %v1127_v50, %v929_v1 }
 0x1dd   : > { %960 = vst.msk [vmem:[%s2058_s28 + $0x8] sm:$0xf] %vm957_vm13, %v951_v13  ;;  %v949_v55 = vpack.c.bf16 %v941_v0, %v941_v0  ;;  %v944_v30 = vmax.f32 %v922_v25, 0.0  ;;  %v914_v23 = vadd.f32 %v1127_v50, %v913_v4 }
 0x1de   : > { %962 = vst.msk [vmem:[%s2058_s28 + $0x10] sm:$0xf] %vm957_vm13, %v953_v2  ;;  %v956_v5 = vpack.c.bf16 %v948_v3, %v948_v3  ;;  %v946_v24 = vmax.f32 %v930_v7, 0.0 }
 0x1df   : > { %958 = vst.msk [vmem:[%s2058_s28] sm:$0xf] %vm957_vm13, %v949_v55  ;;  %v952_v17 = vpack.c.bf16 %v944_v30, %v944_v30  ;;  %v942_v8 = vmax.f32 %v914_v23, 0.0 }
 0x1e0   : > { %965 = vst.msk [vmem:[%s2058_s28 + $0x1c] sm:$0xf] %vm957_vm13, %v956_v5  ;;  %v954_v9 = vpack.c.bf16 %v946_v24, %v946_v24 }
 0x1e1   : > { %961 = vst.msk [vmem:[%s2058_s28 + $0xc] sm:$0xf] %vm957_vm13, %v952_v17  ;;  %v950_v6 = vpack.c.bf16 %v942_v8, %v942_v8 }
 0x1e2   : > { %963 = vst.msk [vmem:[%s2058_s28 + $0x14] sm:$0xf] %vm957_vm13, %v954_v9 }
 0x1e3   : > { %959 = vst.msk [vmem:[%s2058_s28 + $0x4] sm:$0xf] %vm957_vm13, %v950_v6 }
 0x1e4 PF: > { %s21_s23 = sadd.s32 1, %s1582_s23   ;;  %s2116_s21 = sld [smem:[#allocation10_spill]] }
 0x1e5   : > { %p18_p9 = scmp.ge.s32.totalorder %s21_s23, 4   ;;  %s2117_s20 = sld [smem:[#allocation13_spill]] }
 0x1e6   : > { %s2118_s9 = sld [smem:[#allocation11_spill]]  ;;  %s2120_s18 = smov %s1566_s19 }
 0x1e7   : > { %s2119_s22 = sld [smem:[#allocation12_spill]] }
 0x1e8   :  { %20 = sbr.rel (!%p18_p9) target bundleno = 8 (0x8), region = 114 }
 0x1ea   : > { %s2121_s19 = smov %s2116_s21 }
 0x1ec   : > { %s2122_s21 = smov %s2118_s9 }
 0x1ed   :  { %996 = vsyncpa [#allocation4], 1 }
 0x1ee   :  { %998 = vsyncpa [#allocation4 + $0x1], 1 }
 0x1ef   :  { %999 = vsyncpa [#allocation6], 1 }
 0x1f0   :  { %1001 = vsyncpa [#allocation6 + $0x1], 1 }

</bundles_post_ra>
